<compile_context>
chip_gen: v7x
topology: tpu7x:2x2x1
jax: 0.10.0
libtpu: 0.0.40
codegen_flags: <defaults>
</compile_context>

<pallas_src>
import jax
import jax.numpy as jnp
from jax.experimental import pallas as pl
from jax.experimental.pallas import tpu as pltpu


_LANES = 128                  # TPU lane width
_FEATS = 4                    # SharedMLP feature width
_GROUP = _LANES // _FEATS     # 32 batch elements per 128-lane row
_MAX_BLOCK_ROWS = 8192        # 4 MiB of f32 x per grid step (~262K batch elems)


def _round_up(n, m):
    return ((n + m - 1) // m) * m


def shared_mlp_kernel(a_ref, c_ref, b1_ref, b2_ref, x_ref, o_ref):
    """One batch block of the folded SharedMLP forward.

    x_ref : (R, 128) f32 — 32 batch elements x 4 interleaved features per row.
    a_ref : (128, 128) f32 — kron(I_32, W1^T): de-interleave + first layer.
    b1_ref: (1, 128)  f32 — b1 tiled so lane 4m+j carries b1[j].
    c_ref : (128, 128) f32 — kron(I_32, W1^T @ Wfc^T) in columns [:32], zeros
            elsewhere (kept 128-wide so both MXU matmuls have native shapes).
    b2_ref: (1, 32)   f32 — folded bias  b1 @ Wfc^T + bfc.
    o_ref : (R, 32)   f32 — outputs in batch order: o[r, m] = y[32*row + m].
    """
    # First shared_layer (+ ReLU): block-diagonal MXU matmul keeps every vreg
    # fully dense (8 sublanes x 128 lanes); bias add + relu are 2 VPU ops/lane.
    h = jnp.dot(x_ref[...], a_ref[...], preferred_element_type=jnp.float32)
    h = jnp.maximum(h + b1_ref[...], 0.0)

    # Second shared_layer + fc, folded into one block-diagonal matrix.
    # TODO(synk): on v5e this 128-wide C (zero-padded from (128, 32)) makes the
    # kernel mildly MXU-bound; shrink C to (128, 32) once small-N MXU matmuls
    # are confirmed on the target toolchain.
    y = jnp.dot(h, c_ref[...], preferred_element_type=jnp.float32)

    # Only the first 32 lanes are meaningful; the (R, 32) block is contiguous
    # in HBM, so the writeback DMA moves exactly 4 B per batch element.
    o_ref[...] = y[:, :_GROUP] + b2_ref[...]


def shared_mlp_forward(x, w_shared, b_shared, w_fc, b_fc,
                       *, max_block_rows=_MAX_BLOCK_ROWS):
    """x: (B, 4) f32.  Weights in PyTorch Linear convention:
       w_shared: (4, 4) (out, in),  b_shared: (4,)
       w_fc:     (1, 4) (out, in),  b_fc:     (1,)
    Returns (B, 1) f32 with the semantics of the reference SharedMLP.forward."""
    x = jnp.asarray(x, jnp.float32)
    B = x.shape[0]
    assert x.shape[1] == _FEATS

    w1 = jnp.asarray(w_shared, jnp.float32)          # (4, 4)
    b1 = jnp.asarray(b_shared, jnp.float32)          # (4,)
    wf = jnp.asarray(w_fc, jnp.float32)              # (1, 4)
    bf = jnp.asarray(b_fc, jnp.float32)              # (1,)

    # Fold the activation-free second shared_layer application with fc:
    #   y = relu(x @ W1^T + b1) @ (W1^T @ Wfc^T) + (b1 @ Wfc^T + bfc)
    w12 = w1.T @ wf.T                                # (4, 1)
    b12 = (b1 @ wf.T + bf)[0]                        # scalar

    # Constant MXU operands (~128 KiB total, resident in VMEM for the whole
    # grid since their block index never changes).
    eye = jnp.eye(_GROUP, dtype=jnp.float32)
    a_mat = jnp.kron(eye, w1.T)                                       # (128, 128)
    c_mat = jnp.pad(jnp.kron(eye, w12), ((0, 0), (0, _LANES - _GROUP)))  # (128, 128)
    b1_tile = jnp.tile(b1, _GROUP)[None, :]                           # (1, 128)
    b2_tile = jnp.full((1, _GROUP), b12, dtype=jnp.float32)           # (1, 32)

    # Natural layout: (B, 4) row-major flattens for free; each 128-lane row
    # holds 32 consecutive batch elements (features interleaved in lanes).
    n_rows = pl.cdiv(B, _GROUP)

    # Balanced block size (multiple of 8 sublanes).  Keep >= ~8 grid steps for
    # larger problems so both v7x TensorCores get balanced work; for big B the
    # block caps at 8192 rows (4 MiB of x) per step.
    n_steps = max(pl.cdiv(n_rows, max_block_rows), min(8, pl.cdiv(n_rows, 8)))
    block_rows = _round_up(pl.cdiv(n_rows, n_steps), 8)
    n_steps = pl.cdiv(n_rows, block_rows)
    rows_pad = n_steps * block_rows

    flat = x.reshape(-1)                              # free (row-major)
    pad = rows_pad * _LANES - flat.shape[0]
    if pad:
        # TODO(synk): for B not a multiple of 32*block_rows this zero-pad is
        # the one remaining extra HBM pass; a masked ragged last block would
        # remove it.  Padding is aligned to batch-element boundaries, so real
        # outputs are unaffected; padded outputs are sliced off below.
        flat = jnp.pad(flat, (0, pad))
    x2 = flat.reshape(rows_pad, _LANES)               # free (row-major)

    out = pl.pallas_call(
        shared_mlp_kernel,
        out_shape=jax.ShapeDtypeStruct((rows_pad, _GROUP), jnp.float32),
        grid=(n_steps,),
        in_specs=[
            pl.BlockSpec((_LANES, _LANES), lambda i: (0, 0)),        # A
            pl.BlockSpec((_LANES, _LANES), lambda i: (0, 0)),        # C
            pl.BlockSpec((1, _LANES), lambda i: (0, 0)),             # b1 tile
            pl.BlockSpec((1, _GROUP), lambda i: (0, 0)),             # b2 tile
            pl.BlockSpec((block_rows, _LANES), lambda i: (i, 0)),    # x rows
        ],
        out_specs=pl.BlockSpec((block_rows, _GROUP), lambda i: (i, 0)),
        compiler_params=pltpu.CompilerParams(
            dimension_semantics=("parallel",),
            # Raise the scoped VMEM limit explicitly (v5e defaults to 16 MiB);
            # 48 MiB covers 2x 4 MiB x-buffers, 2x 4 MiB (lane-padded) out
            # buffers and the ~8-12 MiB of matmul temporaries, and stays under
            # v7x's 64 MiB per-TensorCore VMEM.
            vmem_limit_bytes=48 * 1024 * 1024,
        ),
    )(a_mat, c_mat, b1_tile, b2_tile, x2)

    # Free reshape back to batch order, then drop the padded rows.
    return out.reshape(-1, 1)[:B]


if __name__ == "__main__":
    key = jax.random.PRNGKey(0)
    kx, k1, k2, k3, k4 = jax.random.split(key, 5)

    # Input matching torch.rand(2, 4).
    x = jax.random.uniform(kx, (2, 4), dtype=jnp.float32)

    # Deterministic parameters (PyTorch Linear shapes: weight is (out, in)).
    w_shared = jax.random.uniform(k1, (4, 4), jnp.float32, -0.5, 0.5)
    b_shared = jax.random.uniform(k2, (4,), jnp.float32, -0.5, 0.5)
    w_fc = jax.random.uniform(k3, (1, 4), jnp.float32, -0.5, 0.5)
    b_fc = jax.random.uniform(k4, (1,), jnp.float32, -0.5, 0.5)

    out = shared_mlp_forward(x, w_shared, b_shared, w_fc, b_fc)
    out = jax.block_until_ready(out)

    # Pure-JAX reference of the original (unfolded) forward semantics, at
    # highest matmul precision so the reference itself is f32-accurate.
    with jax.default_matmul_precision("highest"):
        h_ref = jnp.maximum(x @ w_shared.T + b_shared, 0.0)
        h_ref = h_ref @ w_shared.T + b_shared
        y_ref = h_ref @ w_fc.T + b_fc

    assert out.shape == (2, 1), out.shape
    # Typical agreement is ~1e-6 (f32 MXU); the tolerance is kept loose enough
    # to also cover toolchains that relax f32 contractions to bf16 MXU passes,
    # while still catching any structural/layout error (which would be O(0.1)).
    assert jnp.allclose(out, y_ref, atol=1e-2, rtol=1e-2), (out, y_ref)

    print("KERNEL_OK")
</pallas_src>

<mosaic_0001>
module attributes {stable_mosaic.version = 11 : i64} {
  func.func @shared_mlp_kernel(%arg0: i32, %arg1: memref<128x128xf32, #tpu.memory_space<vmem>>, %arg2: memref<128x128xf32, #tpu.memory_space<vmem>>, %arg3: memref<1x128xf32, #tpu.memory_space<vmem>>, %arg4: memref<1x32xf32, #tpu.memory_space<vmem>>, %arg5: memref<8x128xf32, #tpu.memory_space<vmem>>, %arg6: memref<8x32xf32, #tpu.memory_space<vmem>>) attributes {dimension_semantics = [#tpu.dimension_semantics<parallel>], iteration_bounds = array<i64: 1>, scalar_prefetch = 0 : i64, scratch_operands = 0 : i64, tpu.core_type = #tpu.core_type<tc>, window_params = [{pipeline_mode = #tpu.pipeline_mode<synchronous>, transform_indices = @transform_0, window_bounds = array<i64: 128, 128>}, {pipeline_mode = #tpu.pipeline_mode<synchronous>, transform_indices = @transform_1, window_bounds = array<i64: 128, 128>}, {pipeline_mode = #tpu.pipeline_mode<synchronous>, transform_indices = @transform_2, window_bounds = array<i64: 1, 128>}, {pipeline_mode = #tpu.pipeline_mode<synchronous>, transform_indices = @transform_3, window_bounds = array<i64: 1, 32>}, {transform_indices = @transform_4, window_bounds = array<i64: 8, 128>}, {transform_indices = @transform_5, window_bounds = array<i64: 8, 32>}]} {
    %c0 = arith.constant 0 : index
    %c0_0 = arith.constant 0 : index
    %0 = vector.load %arg5[%c0, %c0_0] : memref<8x128xf32, #tpu.memory_space<vmem>>, vector<8x128xf32>
    %c0_1 = arith.constant 0 : index
    %c0_2 = arith.constant 0 : index
    %1 = vector.load %arg1[%c0_1, %c0_2] : memref<128x128xf32, #tpu.memory_space<vmem>>, vector<128x128xf32>
    %cst = arith.constant dense<0.000000e+00> : vector<8x128xf32>
    %2 = tpu.matmul %0, %1, %cst {dimension_numbers = #tpu.dot_dimension_numbers<[1], [0], [0], [1], [0, 0, 1, 1], [], []>} : vector<8x128xf32>, vector<128x128xf32>, vector<8x128xf32> -> vector<8x128xf32>
    %c0_3 = arith.constant 0 : index
    %c0_4 = arith.constant 0 : index
    %3 = vector.load %arg3[%c0_3, %c0_4] : memref<1x128xf32, #tpu.memory_space<vmem>>, vector<1x128xf32>
    %4 = vector.broadcast %3 : vector<1x128xf32> to vector<8x128xf32>
    %5 = arith.addf %2, %4 : vector<8x128xf32>
    %cst_5 = arith.constant 0.000000e+00 : f32
    %6 = vector.broadcast %cst_5 : f32 to vector<8x128xf32>
    %7 = arith.maximumf %5, %6 : vector<8x128xf32>
    %c0_6 = arith.constant 0 : index
    %c0_7 = arith.constant 0 : index
    %8 = vector.load %arg2[%c0_6, %c0_7] : memref<128x128xf32, #tpu.memory_space<vmem>>, vector<128x128xf32>
    %cst_8 = arith.constant dense<0.000000e+00> : vector<8x128xf32>
    %9 = tpu.matmul %7, %8, %cst_8 {dimension_numbers = #tpu.dot_dimension_numbers<[1], [0], [0], [1], [0, 0, 1, 1], [], []>} : vector<8x128xf32>, vector<128x128xf32>, vector<8x128xf32> -> vector<8x128xf32>
    %10 = vector.extract_strided_slice %9 {offsets = [0, 0], sizes = [8, 32], strides = [1, 1]} : vector<8x128xf32> to vector<8x32xf32>
    %c0_9 = arith.constant 0 : index
    %c0_10 = arith.constant 0 : index
    %11 = vector.load %arg4[%c0_9, %c0_10] : memref<1x32xf32, #tpu.memory_space<vmem>>, vector<1x32xf32>
    %12 = vector.broadcast %11 : vector<1x32xf32> to vector<8x32xf32>
    %13 = arith.addf %10, %12 : vector<8x32xf32>
    %c0_11 = arith.constant 0 : index
    %c0_12 = arith.constant 0 : index
    %14 = vector.load %arg6[%c0_11, %c0_12] : memref<8x32xf32, #tpu.memory_space<vmem>>, vector<8x32xf32>
    tpu.vector_store %arg6[%c0_11, %c0_12], %13 {strides = array<i32>} : memref<8x32xf32, #tpu.memory_space<vmem>>, vector<8x32xf32>,
    return
  }
  func.func @transform_0(%arg0: i32) -> (i32, i32) {
    %c0_i32 = arith.constant 0 : i32
    %c0_i32_0 = arith.constant 0 : i32
    %c0_i32_1 = arith.constant 0 : i32
    return %c0_i32, %c0_i32_0 : i32, i32
  }
  func.func @transform_1(%arg0: i32) -> (i32, i32) {
    %c0_i32 = arith.constant 0 : i32
    %c0_i32_0 = arith.constant 0 : i32
    %c0_i32_1 = arith.constant 0 : i32
    return %c0_i32, %c0_i32_0 : i32, i32
  }
  func.func @transform_2(%arg0: i32) -> (i32, i32) {
    %c0_i32 = arith.constant 0 : i32
    %c0_i32_0 = arith.constant 0 : i32
    %c0_i32_1 = arith.constant 0 : i32
    return %c0_i32, %c0_i32_0 : i32, i32
  }
  func.func @transform_3(%arg0: i32) -> (i32, i32) {
    %c0_i32 = arith.constant 0 : i32
    %c0_i32_0 = arith.constant 0 : i32
    %c0_i32_1 = arith.constant 0 : i32
    return %c0_i32, %c0_i32_0 : i32, i32
  }
  func.func @transform_4(%arg0: i32) -> (i32, i32) {
    %c0_i32 = arith.constant 0 : i32
    %c0_i32_0 = arith.constant 0 : i32
    return %arg0, %c0_i32 : i32, i32
  }
  func.func @transform_5(%arg0: i32) -> (i32, i32) {
    %c0_i32 = arith.constant 0 : i32
    %c0_i32_0 = arith.constant 0 : i32
    return %arg0, %c0_i32 : i32, i32
  }
}

</mosaic_0001>

<bundles_post_ra>
// kernel: tpu_custom_call.1
= control target key start
LH: loop header
LB: loop body
LE: loop exit
PB: predicated region body
PF: predicated region fallthrough
CT: control target
= control target key end

     0   :  { %10 = vsyncpa [#allocation3], 0  ;;  %s589_s0 = inlined_call_operand.hbm [shape: f32[128,128], index: 0, kind: input, shape index: {}]   ;;  %s590_s1 = inlined_call_operand.hbm [shape: f32[128,128], index: 1, kind: input, shape index: {}]   ;;  %s591_s2 = inlined_call_operand.vmem [shape: f32[1,128], index: 2, kind: input, shape index: {}]   ;;  %s592_s3 = inlined_call_operand.vmem [shape: f32[1,32], index: 3, kind: input, shape index: {}]   ;;  %s593_s4 = inlined_call_operand.vmem [shape: f32[8,128], index: 4, kind: input, shape index: {}]   ;;  %s594_s5 = inlined_call_operand.hbm [shape: f32[8,32], index: 5, kind: output, shape index: {}]  }
   0x1   :  { %11 = vsyncpa [#allocation6], 0 }
   0x2   :  { %12 = vsyncpa [#allocation4], 0  ;;  %s490_s18 = smov [#allocation2]   ;;  %s418_s22 = scalar_lea.hbm %s589_s0, 2048 }
   0x3   :  { %s18_s19 = sshll.u32 %s490_s18, 4  ;;  %p419_p0 = scmp.ne.s32.totalorder %s589_s0, %s418_s22  ;;  %s19_s19 = int_to_ptr.vmem [resolvable:$true] %s18_s19 }
   0x4   :  { %p422_p1 = scmp.lt.u32.totalorder %s418_s22, %s589_s0 }
   0x6   :  { %p424_p2 = pnand %p422_p1, %p419_p0 }
   0x8   :  { %427 = shalt.err (!%p424_p2)
}
   0x9   :  { %s428_s27 = scalar_lea.vmem %s19_s19, 2048  ;;  %p433_p4 = scmp.lt.s32.totalorder %s19_s19, %s19_s19 }
   0xa   :  { %p429_p3 = scmp.ne.s32.totalorder %s19_s19, %s428_s27  ;;  %p434_p5 = scmp.lt.s32.totalorder %s428_s27, %s428_s27 }
   0xc   :  { %p435_p6 = por %p434_p5, %p433_p4 }
   0xe   :  { %p436_p7 = pnand %p435_p6, %p429_p3 }
  0x10   :  { %439 = shalt.err (!%p436_p7)
}
  0x11   :  { %s491_s28 = smov 128   ;;  %s492_s29 = smov 8  }
  0x12   :  { %24 = dma.hbm_to_vmem [thread:$0]  %s589_s0, 2048, %s19_s19, [#allocation3], %s491_s28, %s491_s28, %s492_s29  }
  0x13   :  { %s493_s7 = smov [#allocation5]   ;;  %s440_s11 = scalar_lea.hbm %s590_s1, 2048 }
  0x14   :  { %s30_s8 = sshll.u32 %s493_s7, 4  ;;  %p441_p8 = scmp.ne.s32.totalorder %s590_s1, %s440_s11  ;;  %s31_s8 = int_to_ptr.vmem [resolvable:$true] %s30_s8 }
  0x15   :  { %p444_p9 = scmp.lt.u32.totalorder %s440_s11, %s590_s1 }
  0x17   :  { %p446_p10 = pnand %p444_p9, %p441_p8 }
  0x19   :  { %449 = shalt.err (!%p446_p10)
}
  0x1a   :  { %s450_s16 = scalar_lea.vmem %s31_s8, 2048  ;;  %p455_p12 = scmp.lt.s32.totalorder %s31_s8, %s31_s8 }
  0x1b   :  { %p451_p11 = scmp.ne.s32.totalorder %s31_s8, %s450_s16  ;;  %p456_p13 = scmp.lt.s32.totalorder %s450_s16, %s450_s16 }
  0x1d   :  { %p457_p0 = por %p456_p13, %p455_p12 }
  0x1f   :  { %p458_p1 = pnand %p457_p0, %p451_p11 }
  0x21   :  { %461 = shalt.err (!%p458_p1)
}
  0x22   :  { %36 = dma.hbm_to_vmem [thread:$0]  %s590_s1, 2048, %s31_s8, [#allocation6], %s491_s28, %s491_s28, %s492_s29  }
  0x23   :  { %484 = dma.done.wait [#allocation3], 2048  }
  0x24   :  { %485 = vsyncadd [#allocation3], 4294965248 }
  0x25   :  { %486 = dma.done.wait [#allocation6], 2048  }
  0x26   :  { %487 = vsyncadd [#allocation6], 4294965248  ;;  %v494_v0 = vmov 0.0|0.0   ;;  %vm495_vm0 = vmmov 0   ;;  %v496_v1 = vmov 0.0   ;;  %v50_v2 = vld [vmem:[#allocation2] sm:$0xff] }
  0x27   :  { %362 = vmatprep.subr.bf16.mxu0 %v494_v0  ;;  %324 = vmatprep.mubr.msk.f32.mxu0 %vm495_vm0, %v496_v1  ;;  %v51_v3 = vld [vmem:[#allocation2 + $0x8] sm:$0xff]  ;;  %v52_v4 = vld [vmem:[#allocation2 + $0x10] sm:$0xff]  ;;  %v53_v6 = vld [vmem:[#allocation2 + $0x18] sm:$0xff]  ;;  %vm238_vm1 = vcmask 261120  }
  0x28   :  { %386 = vmatprep.subr.bf16.mxu1 %v494_v0  ;;  %359 = vmatprep.mubr.msk.f32.mxu1 %vm495_vm0, %v496_v1  ;;  %v363_v5 = vpack.c.bf16 %v51_v3, %v50_v2  ;;  %v366_v7 = vpack.c.bf16 %v53_v6, %v52_v4  ;;  %v54_v8 = vld [vmem:[#allocation2 + $0x20] sm:$0xff]  ;;  %v55_v9 = vld [vmem:[#allocation2 + $0x28] sm:$0xff]  ;;  %v146_v12 = vld [vmem:[#allocation5 + $0x10] sm:$0xff] }
  0x29   :  { %v144_v10 = vld [vmem:[#allocation5] sm:$0xff]  ;;  %v145_v11 = vld [vmem:[#allocation5 + $0x8] sm:$0xff]  ;;  %v147_v13 = vld [vmem:[#allocation5 + $0x18] sm:$0xff]  ;;  %v369_v14 = vpack.c.bf16 %v55_v9, %v54_v8 }
  0x2a   :  { %364 = vmatpush3.bf16.msra.mxu0 %v363_v5  ;;  %v387_v15 = vpack.c.bf16 %v145_v11, %v144_v10  ;;  %v56_v16 = vld [vmem:[#allocation2 + $0x30] sm:$0xff]  ;;  %v57_v17 = vld [vmem:[#allocation2 + $0x38] sm:$0xff]  ;;  %v390_v18 = vpack.c.bf16 %v147_v13, %v146_v12  ;;  %v148_v19 = vld [vmem:[#allocation5 + $0x20] sm:$0xff] }
  0x2b   :  { %365 = vmatprep.subr.bf16.mxu0 %v494_v0  ;;  %v149_v20 = vld [vmem:[#allocation5 + $0x28] sm:$0xff]  ;;  %v372_v21 = vpack.c.bf16 %v57_v17, %v56_v16  ;;  %v58_v22 = vld [vmem:[#allocation2 + $0x40] sm:$0xff]  ;;  %v150_v25 = vld [vmem:[#allocation5 + $0x30] sm:$0xff] }
  0x2c   :  { %388 = vmatpush3.bf16.msra.mxu1 %v387_v15  ;;  %v59_v23 = vld [vmem:[#allocation2 + $0x48] sm:$0xff]  ;;  %v393_v24 = vpack.c.bf16 %v149_v20, %v148_v19  ;;  %v151_v26 = vld [vmem:[#allocation5 + $0x38] sm:$0xff]  ;;  %v60_v28 = vld [vmem:[#allocation2 + $0x50] sm:$0xff] }
  0x2d   :  { %389 = vmatprep.subr.bf16.mxu1 %v494_v0  ;;  %v375_v27 = vpack.c.bf16 %v59_v23, %v58_v22  ;;  %v61_v29 = vld [vmem:[#allocation2 + $0x58] sm:$0xff]  ;;  %v396_v30 = vpack.c.bf16 %v151_v26, %v150_v25  ;;  %v152_v31 = vld [vmem:[#allocation5 + $0x40] sm:$0xff]  ;;  %v153_v32 = vld [vmem:[#allocation5 + $0x48] sm:$0xff] }
  0x2e   :  { %367 = vmatpush3.bf16.msra.mxu0 %v366_v7  ;;  %v378_v33 = vpack.c.bf16 %v61_v29, %v60_v28  ;;  %v62_v34 = vld [vmem:[#allocation2 + $0x60] sm:$0xff]  ;;  %v63_v35 = vld [vmem:[#allocation2 + $0x68] sm:$0xff]  ;;  %v399_v36 = vpack.c.bf16 %v153_v32, %v152_v31  ;;  %v154_v37 = vld [vmem:[#allocation5 + $0x50] sm:$0xff] }
  0x2f   :  { %368 = vmatprep.subr.bf16.mxu0 %v494_v0  ;;  %v155_v38 = vld [vmem:[#allocation5 + $0x58] sm:$0xff]  ;;  %v381_v39 = vpack.c.bf16 %v63_v35, %v62_v34  ;;  %v64_v40 = vld [vmem:[#allocation2 + $0x70] sm:$0xff]  ;;  %v156_v43 = vld [vmem:[#allocation5 + $0x60] sm:$0xff] }
  0x30   :  { %391 = vmatpush3.bf16.msra.mxu1 %v390_v18  ;;  %v65_v41 = vld [vmem:[#allocation2 + $0x78] sm:$0xff]  ;;  %v402_v42 = vpack.c.bf16 %v155_v38, %v154_v37  ;;  %v157_v44 = vld [vmem:[#allocation5 + $0x68] sm:$0xff]  ;;  %v49_v47 = vld [vmem:[%s593_s4] sm:$0xff]  ;;  %s497_s4 = smov [#allocation7]  }
  0x31   :  { %392 = vmatprep.subr.bf16.mxu1 %v494_v0  ;;  %v384_v45 = vpack.c.bf16 %v65_v41, %v64_v40  ;;  %v405_v46 = vpack.c.bf16 %v157_v44, %v156_v43  ;;  %v158_v48 = vld [vmem:[#allocation5 + $0x70] sm:$0xff]  ;;  %v159_v49 = vld [vmem:[#allocation5 + $0x78] sm:$0xff]  ;;  %v256_v51 = vld [vmem:[%s591_s2] ss:$0 sm:$0xff]  ;;  %s246_s23 = sshll.u32 %s497_s4, 4  ;;  %s247_s23 = int_to_ptr.vmem [resolvable:$true] %s246_s23 }
  0x32   :  { %370 = vmatpush3.bf16.msra.mxu0 %v369_v14  ;;  %v408_v50 = vpack.c.bf16 %v159_v49, %v158_v48  ;;  %v257_v56 = vld [vmem:[%s592_s3] ss:$0 sm:$0xff]  ;;  %s462_s24 = scalar_lea.vmem %s247_s23, 128  ;;  %p467_p3 = scmp.lt.s32.totalorder %s247_s23, %s247_s23 }
  0x33   :  { %371 = vmatprep.subr.bf16.mxu0 %v494_v0  ;;  %p463_p2 = scmp.ne.s32.totalorder %s247_s23, %s462_s24  ;;  %p468_p4 = scmp.lt.s32.totalorder %s462_s24, %s462_s24 }
  0x34   :  { %394 = vmatpush3.bf16.msra.mxu1 %v393_v24 }
  0x35   :  { %395 = vmatprep.subr.bf16.mxu1 %v494_v0  ;;  %p469_p5 = por %p468_p4, %p467_p3 }
  0x36   :  { %373 = vmatpush3.bf16.msra.mxu0 %v372_v21 }
  0x37   :  { %374 = vmatprep.subr.bf16.mxu0 %v494_v0  ;;  %p470_p6 = pnand %p469_p5, %p463_p2 }
  0x38   :  { %397 = vmatpush3.bf16.msra.mxu1 %v396_v30 }
  0x39   :  { %398 = vmatprep.subr.bf16.mxu1 %v494_v0 }
  0x3a   :  { %376 = vmatpush3.bf16.msra.mxu0 %v375_v27 }
  0x3b   :  { %377 = vmatprep.subr.bf16.mxu0 %v494_v0 }
  0x3c   :  { %400 = vmatpush3.bf16.msra.mxu1 %v399_v36 }
  0x3d   :  { %401 = vmatprep.subr.bf16.mxu1 %v494_v0 }
  0x3e   :  { %379 = vmatpush3.bf16.msra.mxu0 %v378_v33 }
  0x3f   :  { %380 = vmatprep.subr.bf16.mxu0 %v494_v0 }
  0x40   :  { %403 = vmatpush3.bf16.msra.mxu1 %v402_v42 }
  0x41   :  { %404 = vmatprep.subr.bf16.mxu1 %v494_v0 }
  0x42   :  { %382 = vmatpush3.bf16.msra.mxu0 %v381_v39 }
  0x43   :  { %383 = vmatprep.subr.bf16.mxu0 %v494_v0 }
  0x44   :  { %406 = vmatpush3.bf16.msra.mxu1 %v405_v46 }
  0x45   :  { %407 = vmatprep.subr.bf16.mxu1 %v494_v0 }
  0x46   :  { %385 = vmatpush3.bf16.msra.mxu0 %v384_v45 }
  0x48   :  { %409 = vmatpush3.bf16.msra.mxu1 %v408_v50 }
  0x49   :  { %325 = vmatmul.mubr.f32.vlgmr.msra.gmra.mrb[0].mxu0 %v49_v47 }
 0x11c   :  { %v139_v52 = vpop.f32.mrb[0].mxu0 }
 0x11d   :  { %v140_v53 = vadd.f32 %v256_v51, %v139_v52  ;;  %v326_v54 = vpop.f32.mrb[1].mxu0 }
 0x11f   :  { %v143_v55 = vmax.f32 %v140_v53, 0.0 }
 0x121   :  { %360 = vmatmul.mubr.f32.vlgmr.msra.gmra.mrb[0].mxu1 %v143_v55 }
 0x1f4   :  { %v226_v57 = vpop.f32.mrb[0].mxu1 }
 0x1f5   :  { %v237_v58 = vadd.f32 %v257_v56, %v226_v57  ;;  %v361_v59 = vpop.f32.mrb[1].mxu1 }
 0x1f7   :  { %239 = vst.msk [vmem:[#allocation7] sm:$0xff] %vm238_vm1, %v237_v58 }
 0x1f8   :  { %473 = shalt.err (!%p470_p6)
}
 0x1f9   :  { %s474_s26 = scalar_lea.hbm %s594_s5, 128 }
 0x1fa   :  { %p475_p7 = scmp.ne.s32.totalorder %s594_s5, %s474_s26  ;;  %p478_p8 = scmp.lt.u32.totalorder %s474_s26, %s594_s5 }
 0x1fc   :  { %p480_p9 = pnand %p478_p8, %p475_p7 }
 0x1fe   :  { %483 = shalt.err (!%p480_p9)
}
 0x1ff   :  { %249 = dma.vmem_to_hbm [thread:$0]  %s247_s23, 128, %s594_s5, [#allocation4]  }
 0x200   :  { %488 = dma.done.wait [#allocation4], 128  }
 0x201   :  { %489 = vsyncadd [#allocation4], 4294967168 }
 0x202   :  { %253 = vsyncpa [#allocation3], 1 }
 0x203   :  { %254 = vsyncpa [#allocation6], 1 }
 0x204   :  { %255 = vsyncpa [#allocation4], 1 }

</bundles_post_ra>
